<compile_context>
chip_gen: v6e
topology: v6e:2x2x1
jax: 0.10.0
libtpu: 0.0.40
codegen_flags: <defaults>
</compile_context>

<pallas_src>
import functools
import math

import jax
import jax.numpy as jnp
from jax import lax
from jax.experimental import pallas as pl
from jax.experimental.pallas import tpu as pltpu


_VMEM_LIMIT_BYTES = 32 * 1024 * 1024  # fits scoped VMEM on v5e/v6e (128 MiB) and v7x (64 MiB)
_BLOCK_ELEMS = 1 << 20                # ~1M elems / input block (4 MiB f32) -> >=85% HBM roofline
_MAX_TM = 4096                        # bounds the lane-padded (tm, 128) output buffer
_SPLIT_TM = 512                       # row tile for the HW-split accumulator path


# --------------------------------------------------------------------------- #
# helpers
# --------------------------------------------------------------------------- #
def _sublane_pack(dtype):
    itemsize = jnp.dtype(dtype).itemsize
    return {4: 8, 2: 16, 1: 32}.get(itemsize, 8)


def _round_down(x, m):
    return max(m, (x // m) * m)


def _round_up(x, m):
    return ((x + m - 1) // m) * m


def _num_tensorcores():
    """Best-effort TensorCore count (v7x: 2/chip). Defaults to 1 (v5e/v6e),
    i.e. no forced grid split — which is the right call on single-core parts."""
    try:
        info = pltpu.get_tpu_info()
    except Exception:
        return 1
    for name in ("num_cores", "core_count", "num_tensorcores",
                 "tensorcore_count", "cores_per_chip", "num_tensor_cores"):
        v = getattr(info, name, None)
        if isinstance(v, int) and 1 <= v <= 16:
            return v
    return 1


def _native_bf16_ok():
    """bf16 VPU math exists on v6e/v7x only (v5e has no bf16 VALU)."""
    try:
        kind = jax.devices()[0].device_kind.lower()
    except Exception:
        return False
    return any(tag in kind for tag in ("v6", "v7", "tpu7"))


def _cap_for_cores(tm, total_rows, sub, cores):
    """On multi-TC chips, keep >= 2*cores grid steps along the parallel axis so
    both cores get work.  No-op when cores == 1 (v5e/v6e): biggest tile wins."""
    if cores <= 1:
        return tm
    steps = 2 * cores
    if total_rows >= steps * sub:
        tm = min(tm, _round_down(total_rows // steps, sub))
    return tm


def _compiler_params(dimension_semantics):
    return pltpu.CompilerParams(dimension_semantics=dimension_semantics,
                                vmem_limit_bytes=_VMEM_LIMIT_BYTES)


def _pow_p(x, p):
    """x**p; integral 1 <= p <= 16 -> unrolled VPU multiply chain (no EUP)."""
    if float(p).is_integer() and 1 <= int(p) <= 16:
        n = int(p)
        result = None
        base = x
        while n:
            if n & 1:
                result = base if result is None else result * base
            n >>= 1
            if n:
                base = base * base
        return result
    return x ** p


# --------------------------------------------------------------------------- #
# kernels
# --------------------------------------------------------------------------- #
def _gem_kernel_fused(x_ref, o_ref, *, p, inv_p, eps, hw, compute_dtype):
    # Full HW reduction per block.  Partial row blocks may contain garbage rows;
    # rows are independent and those (possibly inf/nan) outputs are dropped by
    # the masked partial store of the (tm, 1) output block.
    x = x_ref[...].astype(compute_dtype)
    xp = _pow_p(jnp.maximum(x, eps), p)
    s = jnp.sum(xp.astype(jnp.float32), axis=-1, keepdims=True)
    o_ref[...] = ((s * (1.0 / hw)) ** inv_p).astype(o_ref.dtype)


def _gem_kernel_matmul(x_ref, ones_ref, o_ref, *, p, inv_p, eps, hw,
                       compute_dtype, precision):
    # Grouped layout: each block row holds G channels' full hw pixels back to
    # back (contiguous, lane-dense DMA).  Per-channel sums are recovered with a
    # static block-diagonal ones matmul on the otherwise-idle MXU; the output
    # slab (tm, G) is lane-dense.
    x = x_ref[...].astype(compute_dtype)
    xp = _pow_p(jnp.maximum(x, eps), p)
    sums = jnp.dot(xp, ones_ref[...],
                   preferred_element_type=jnp.float32, precision=precision)
    o_ref[...] = ((sums * (1.0 / hw)) ** inv_p).astype(o_ref.dtype)


def _gem_kernel_split(x_ref, o_ref, acc_ref, *, p, inv_p, eps, hw, thw,
                      has_tail, compute_dtype):
    # Huge HW: reduction split over grid axis 1 (last, "arbitrary") with an
    # f32 accumulator scratch; init / finalize via pl.when.
    k = pl.program_id(1)
    nk = pl.num_programs(1)

    @pl.when(k == 0)
    def _():
        acc_ref[...] = jnp.zeros_like(acc_ref)

    x = x_ref[...].astype(compute_dtype)
    xp = _pow_p(jnp.maximum(x, eps), p).astype(jnp.float32)

    if has_tail:
        # Only the final HW block carries out-of-range columns -> only it pays
        # for the iota / compare / select mask.
        @pl.when(k < nk - 1)
        def _():
            acc_ref[...] += jnp.sum(xp, axis=-1, keepdims=True)

        @pl.when(k == nk - 1)
        def _():
            col = k * thw + lax.broadcasted_iota(jnp.int32, xp.shape, 1)
            acc_ref[...] += jnp.sum(jnp.where(col < hw, xp, 0.0),
                                    axis=-1, keepdims=True)
    else:
        acc_ref[...] += jnp.sum(xp, axis=-1, keepdims=True)

    @pl.when(k == nk - 1)
    def _():
        o_ref[...] = ((acc_ref[...] * (1.0 / hw)) ** inv_p).astype(o_ref.dtype)


# --------------------------------------------------------------------------- #
# wrapper
# --------------------------------------------------------------------------- #
def generalized_mean_pooling(x, norm=3, eps=1e-6, *, block_elems=_BLOCK_ELEMS):
    """GeM pooling with output_size=1: (N, C, H, W) -> (N, C, 1, 1)."""
    p = float(norm)
    assert p > 0
    inv_p = 1.0 / p
    n, c, h, w = x.shape
    rows = n * c
    hw = h * w

    sub = _sublane_pack(x.dtype)
    cores = _num_tensorcores()
    compute_dtype = (x.dtype if (x.dtype == jnp.bfloat16 and _native_bf16_ok())
                     else jnp.float32)

    # ---- path 1: small, non-lane-aligned hw -> grouped segmented-sum matmul --
    g = 0
    if hw % 128 != 0 and hw <= 512:
        g0 = 128 // math.gcd(hw, 128)           # smallest G with (G*hw) % 128 == 0
        for mult in (4, 2, 1):                   # prefer a more lane-dense output
            cand = g0 * mult
            if (cand <= 512 and rows % cand == 0
                    and cand * hw <= block_elems            # >=1 grouped row / block
                    and cand * cand * hw <= block_elems):   # ones matrix stays small
                g = cand
                break
    if g > 0:
        rows_g = rows // g
        gk = g * hw
        xg = x.reshape(rows_g, gk)
        ones_mat = (
            (jnp.arange(gk, dtype=jnp.int32)[:, None] // hw)
            == jnp.arange(g, dtype=jnp.int32)[None, :]
        ).astype(compute_dtype)

        x_block_elems = max(block_elems // 2, gk)    # headroom for f32 temps + ones
        tm = min(max(x_block_elems // gk, 1), _MAX_TM)
        if rows_g <= tm:
            tm = rows_g                              # single block, full row dim
        else:
            tm = _round_down(max(tm, sub), sub)
        tm = _cap_for_cores(tm, rows_g, sub, cores)

        precision = (jax.lax.Precision.HIGHEST
                     if compute_dtype == jnp.float32 else None)
        kernel = functools.partial(_gem_kernel_matmul, p=p, inv_p=inv_p, eps=eps,
                                   hw=hw, compute_dtype=compute_dtype,
                                   precision=precision)
        out = pl.pallas_call(
            kernel,
            out_shape=jax.ShapeDtypeStruct((rows_g, g), x.dtype),
            grid=(pl.cdiv(rows_g, tm),),
            in_specs=[pl.BlockSpec((tm, gk), lambda i: (i, 0)),
                      pl.BlockSpec((gk, g), lambda i: (0, 0))],
            out_specs=pl.BlockSpec((tm, g), lambda i: (i, 0)),
            compiler_params=_compiler_params(("parallel",)),
        )(xg, ones_mat)
        return out.reshape(n, c, 1, 1)

    xf = x.reshape(rows, hw)
    out_shape = jax.ShapeDtypeStruct((rows, 1), x.dtype)

    if sub * hw <= block_elems:
        # ---- path 2: fused full-HW reduction per row block -------------------
        tm = min(block_elems // hw, _MAX_TM, _round_up(rows, sub))
        tm = _round_down(tm, sub)
        tm = _cap_for_cores(tm, rows, sub, cores)

        kernel = functools.partial(_gem_kernel_fused, p=p, inv_p=inv_p, eps=eps,
                                   hw=hw, compute_dtype=compute_dtype)
        out = pl.pallas_call(
            kernel,
            out_shape=out_shape,
            grid=(pl.cdiv(rows, tm),),
            in_specs=[pl.BlockSpec((tm, hw), lambda i: (i, 0))],
            out_specs=pl.BlockSpec((tm, 1), lambda i: (i, 0)),
            compiler_params=_compiler_params(("parallel",)),
        )(xf)
    else:
        # ---- path 3: very large HW -> split reduction + f32 accumulator ------
        tm = _round_down(min(_SPLIT_TM, _round_up(rows, sub)), sub)
        thw = _round_down(max(block_elems // tm, 128), 128)
        thw = min(thw, _round_up(hw, 128))
        has_tail = (hw % thw) != 0

        kernel = functools.partial(_gem_kernel_split, p=p, inv_p=inv_p, eps=eps,
                                   hw=hw, thw=thw, has_tail=has_tail,
                                   compute_dtype=compute_dtype)
        out = pl.pallas_call(
            kernel,
            out_shape=out_shape,
            grid=(pl.cdiv(rows, tm), pl.cdiv(hw, thw)),
            in_specs=[pl.BlockSpec((tm, thw), lambda i, k: (i, k))],
            out_specs=pl.BlockSpec((tm, 1), lambda i, k: (i, 0)),
            scratch_shapes=[pltpu.VMEM((tm, 1), jnp.float32)],
            compiler_params=_compiler_params(("parallel", "arbitrary")),
        )(xf)

    return out.reshape(n, c, 1, 1)


# --------------------------------------------------------------------------- #
# tests
# --------------------------------------------------------------------------- #
if __name__ == "__main__":
    def _reference(xx, norm=3, eps=1e-6):
        pp = float(norm)
        xp = jnp.maximum(xx.astype(jnp.float32), eps) ** pp
        return (jnp.mean(xp, axis=(2, 3), keepdims=True) ** (1.0 / pp)).astype(xx.dtype)

    key = jax.random.PRNGKey(0)
    k1, k2, k3 = jax.random.split(key, 3)

    # 1) module-consistent small shape -> fused path (hw = 256, lane aligned).
    x1 = jax.random.normal(k1, (2, 4, 16, 16), dtype=jnp.float32)
    y1 = jax.block_until_ready(generalized_mean_pooling(x1, norm=3, eps=1e-6))
    assert y1.shape == (2, 4, 1, 1), y1.shape
    assert jnp.allclose(y1, _reference(x1), rtol=1e-5, atol=1e-5), (
        float(jnp.max(jnp.abs(y1 - _reference(x1)))))

    # 2) odd sizes -> fused path with a partial row block and non-128 hw.
    x2 = jax.random.normal(k2, (2, 3, 20, 33), dtype=jnp.float32)
    y2 = jax.block_until_ready(generalized_mean_pooling(x2, norm=3, eps=1e-6))
    assert y2.shape == (2, 3, 1, 1), y2.shape
    assert jnp.allclose(y2, _reference(x2), rtol=1e-5, atol=1e-5), (
        float(jnp.max(jnp.abs(y2 - _reference(x2)))))

    # 3) force the HW-split accumulator path (masked tail block only on last k).
    y3 = jax.block_until_ready(
        generalized_mean_pooling(x2, norm=3, eps=1e-6, block_elems=4096))
    assert jnp.allclose(y3, _reference(x2), rtol=1e-5, atol=1e-5), (
        float(jnp.max(jnp.abs(y3 - _reference(x2)))))

    # 4) canonical GeM spatial size (7x7) -> grouped segmented-sum-matmul path.
    x4 = jax.random.normal(k3, (2, 64, 7, 7), dtype=jnp.float32)
    y4 = jax.block_until_ready(generalized_mean_pooling(x4, norm=3, eps=1e-6))
    assert y4.shape == (2, 64, 1, 1), y4.shape
    # Tolerance covers possible reduced MXU f32 pass precision across chips.
    assert jnp.allclose(y4, _reference(x4), rtol=3e-3, atol=3e-3), (
        float(jnp.max(jnp.abs(y4 - _reference(x4)))))

    print("KERNEL_OK")
</pallas_src>

<mosaic_0001>
module attributes {stable_mosaic.version = 11 : i64} {
  func.func @_gem_kernel_fused(%arg0: i32, %arg1: memref<8x256xf32, #tpu.memory_space<vmem>>, %arg2: memref<8x1xf32, #tpu.memory_space<vmem>>) attributes {dimension_semantics = [#tpu.dimension_semantics<parallel>], iteration_bounds = array<i64: 1>, scalar_prefetch = 0 : i64, scratch_operands = 0 : i64, tpu.core_type = #tpu.core_type<tc>, window_params = [{transform_indices = @transform_0, window_bounds = array<i64: 8, 256>}, {transform_indices = @transform_1, window_bounds = array<i64: 8, 1>}]} {
    %c0 = arith.constant 0 : index
    %c0_0 = arith.constant 0 : index
    %0 = vector.load %arg1[%c0, %c0_0] : memref<8x256xf32, #tpu.memory_space<vmem>>, vector<8x256xf32>
    %cst = arith.constant 9.99999997E-7 : f32
    %1 = vector.broadcast %cst : f32 to vector<8x256xf32>
    %2 = arith.maximumf %0, %1 : vector<8x256xf32>
    %3 = arith.mulf %2, %2 : vector<8x256xf32>
    %4 = arith.mulf %2, %3 : vector<8x256xf32>
    %cst_1 = arith.constant dense<0.000000e+00> : vector<8xf32>
    %5 = vector.multi_reduction <add>, %4, %cst_1 [1] : vector<8x256xf32> to vector<8xf32>
    %6 = vector.shape_cast %5 : vector<8xf32> to vector<8x1xf32>
    %cst_2 = arith.constant 3.906250e-03 : f32
    %7 = vector.broadcast %cst_2 : f32 to vector<8x1xf32>
    %8 = arith.mulf %6, %7 : vector<8x1xf32>
    %cst_3 = arith.constant 0.333333343 : f32
    %9 = vector.broadcast %cst_3 : f32 to vector<8x1xf32>
    %10 = math.powf %8, %9 : vector<8x1xf32>
    %c0_4 = arith.constant 0 : index
    %c0_5 = arith.constant 0 : index
    %11 = vector.load %arg2[%c0_4, %c0_5] : memref<8x1xf32, #tpu.memory_space<vmem>>, vector<8x1xf32>
    tpu.vector_store %arg2[%c0_4, %c0_5], %10 {strides = array<i32>} : memref<8x1xf32, #tpu.memory_space<vmem>>, vector<8x1xf32>,
    return
  }
  func.func @transform_0(%arg0: i32) -> (i32, i32) {
    %c0_i32 = arith.constant 0 : i32
    %c0_i32_0 = arith.constant 0 : i32
    return %arg0, %c0_i32 : i32, i32
  }
  func.func @transform_1(%arg0: i32) -> (i32, i32) {
    %c0_i32 = arith.constant 0 : i32
    %c0_i32_0 = arith.constant 0 : i32
    return %arg0, %c0_i32 : i32, i32
  }
}

</mosaic_0001>

<bundles_post_ra>
// kernel: tpu_custom_call.1
= control target key start
LH: loop header
LB: loop body
LE: loop exit
PB: predicated region body
PF: predicated region fallthrough
CT: control target
= control target key end

     0   :  { %6 = vsyncpa [#allocation3], 0  ;;  %s85_s6 = smov [#allocation2]   ;;  %s102_s0 = inlined_call_operand.hbm [shape: f32[8,256], index: 0, kind: input, shape index: {}]   ;;  %s103_s1 = inlined_call_operand.vmem [shape: f32[8,1], index: 1, kind: output, shape index: {}]  }
   0x1   :  { %s13_s7 = sshll.u32 %s85_s6, 4  ;;  %s14_s7 = int_to_ptr.vmem [resolvable:$true] %s13_s7 }
   0x2   :  { %s71_s8 = scalar_lea.vmem %s14_s7, 256  ;;  %p76_p1 = scmp.lt.s32.totalorder %s14_s7, %s14_s7 }
   0x3   :  { %p72_p0 = scmp.ne.s32.totalorder %s14_s7, %s71_s8  ;;  %p77_p2 = scmp.lt.s32.totalorder %s71_s8, %s71_s8 }
   0x5   :  { %p78_p3 = por %p77_p2, %p76_p1 }
   0x7   :  { %p79_p4 = pnand %p78_p3, %p72_p0 }
   0x9   :  { %82 = shalt.err (!%p79_p4)
}
   0xa   :  { %16 = dma.hbm_to_vmem [thread:$0]  %s102_s0, 256, %s14_s7, [#allocation3]  }
   0xb   :  { %83 = dma.done.wait [#allocation3], 256  }
   0xc   :  { %84 = vsyncadd [#allocation3], 4294967040  ;;  %v20_v0 = vld [vmem:[#allocation2] sm:$0xff]  ;;  %v21_v1 = vld [vmem:[#allocation2 + $0x8] sm:$0xff]  ;;  %vm33_vm4 = vcmask 7168  }
   0xd   :  { %v22_v2 = vmax.f32 %v20_v0, 1e-06  ;;  %v23_v3 = vmax.f32 %v21_v1, 1e-06 }
   0xf   :  { %v24_v4 = vmul.f32 %v22_v2, %v22_v2  ;;  %v25_v5 = vmul.f32 %v23_v3, %v23_v3 }
  0x11   :  { %v26_v6 = vmul.f32 %v24_v4, %v22_v2  ;;  %v27_v7 = vmul.f32 %v25_v5, %v23_v3 }
  0x13   :  { %v28_v8 = vadd.f32 %v27_v7, %v26_v6 }
  0x15   :  { %29 = vadd.xlane.f32.xlu0 %v28_v8 }
  0x9e   :  { %v30_v9 = vpop.xlane.xlu0 %29 }
  0x9f   :  { %v31_v10 = vmul.f32 0.00390625, %v30_v9 }
  0xa1   :  { %v42_v11 = vand.u32 2147483647, %v31_v10  ;;  %v46_v14 = vand.u32 2147483648, %v31_v10  ;;  %vm41_vm2 = vcmp.lt.f32.partialorder %v31_v10, 0.0  ;;  %vm40_vm3 = vcmp.eq.f32.partialorder %v31_v10, 0.0 }
  0xa3   :  { %59 = vlog2.f32 %v42_v11  ;;  %vm50_vm0 = vweird.f32 %v42_v11  ;;  %vm52_vm1 = vcmp.eq.f32.partialorder %v42_v11, 0.0  ;;  %vm43_vm5 = vcmp.eq.f32.partialorder %v42_v11, inf }
  0xb0   :  { %v60_v12 = vpop.eup %59 }
  0xb1   :  { %v47_v13 = vmul.f32 0.33333334, %v60_v12 }
  0xb3   :  { %61 = vpow2.f32 %v47_v13 }
  0xc0   :  { %v62_v15 = vpop.eup %61 }
  0xc1   :  { %v49_v16 = vor.u32 %v62_v15, %v46_v14 }
  0xc3   :  { %v51_v17 = vsel %vm50_vm0, %v31_v10, %v49_v16 }
  0xc4   :  { %v54_v18 = vsel %vm52_vm1, %v46_v14, %v51_v17 }
  0xc5   :  { %v55_v19 = vsel %vm41_vm2, nan, %v54_v18 }
  0xc6   :  { %v56_v20 = vsel %vm40_vm3, 0.0, %v55_v19 }
  0xc7   :  { %v57_v21 = vsel %vm43_vm5, inf, %v56_v20 }
  0xc8   :  { %34 = vst.msk [vmem:[%s103_s1] sm:$0xff] %vm33_vm4, %v57_v21 }
  0xc9   :  { %39 = vsyncpa [#allocation3], 1 }

</bundles_post_ra>
